<compile_context>
chip_gen: v7x
topology: tpu7x:2x2x1
jax: 0.10.0
libtpu: 0.0.40
codegen_flags: <defaults>
</compile_context>

<pallas_src>
import functools

import jax
import jax.numpy as jnp
from jax.experimental import pallas as pl
from jax.experimental.pallas import tpu as pltpu


_LANES = 128
_TILE_BYTES_TARGET = 2 * 1024 * 1024     # >= 2 MiB of each input per grid step
_VMEM_LIMIT = 32 * 1024 * 1024           # 2 inputs x 2 buffers x 2 MiB + slack


def _round_up(x, m):
    return ((x + m - 1) // m) * m


# ---------------------------------------------------------------------------
# Forward: mean L1 / MSE  (nn.L1Loss / nn.MSELoss, reduction='mean')
# ---------------------------------------------------------------------------
def _loss_kernel(pred_ref, gt_ref, out_ref, *, mode, tile_r, rows, inner):
    """Streaming sum of |pred-gt| or (pred-gt)^2 into an (8,128) accumulator.

    The output block (8,128) keeps the same block index for every inner grid
    step, so it stays resident in VMEM and doubles as the accumulator.  The
    final tiny cross-lane reduce and the 1/n scaling happen in the wrapper.
    """
    c = pl.program_id(0)
    j = pl.program_id(1)

    @pl.when(j == 0)
    def _():
        out_ref[...] = jnp.zeros_like(out_ref)

    blk = c * inner + j            # logical block index along the row stream
    row0 = blk * tile_r            # first logical row handled by this step
    n_chunks = tile_r // 8

    def _chunk(r):
        # Fused: load 8 rows of each input, cast, subtract, |.| or square.
        s = pl.multiple_of(r * 8, 8)
        d = (pred_ref[pl.ds(s, 8), :].astype(jnp.float32)
             - gt_ref[pl.ds(s, 8), :].astype(jnp.float32))
        return jnp.abs(d) if mode == "L1" else d * d

    zero = jnp.zeros((8, _LANES), jnp.float32)

    # Hot path: every row of this block is valid -> no masking at all.
    @pl.when(row0 + tile_r <= rows)
    def _():
        acc = jax.lax.fori_loop(0, n_chunks, lambda r, a: a + _chunk(r),
                                zero, unroll=min(8, n_chunks))
        out_ref[...] += acc

    # Ragged final block (and the at-most-one fully out-of-range block created
    # by rounding the grid up for the 2-way core split): mask rows >= `rows`.
    @pl.when(row0 + tile_r > rows)
    def _():
        iota8 = jax.lax.broadcasted_iota(jnp.int32, (8, _LANES), 0)

        def body(r, a):
            v = _chunk(r)
            rid = row0 + r * 8 + iota8
            return a + jnp.where(rid < rows, v, 0.0)

        acc = jax.lax.fori_loop(0, n_chunks, body, zero,
                                unroll=min(8, n_chunks))
        out_ref[...] += acc


def loss_forward(pred, gt, mode="L1"):
    assert pred.shape == gt.shape
    n = pred.size
    itemsize = jnp.dtype(pred.dtype).itemsize
    rows = pl.cdiv(n, _LANES)

    flat_p = jnp.ravel(pred)       # free reshape of a contiguous array
    flat_g = jnp.ravel(gt)
    if rows * _LANES != n:
        # Rare case (n not a multiple of 128): tiny zero pad (<128 elements);
        # zeros contribute 0 to both |d| and d^2.  Tile-level raggedness (the
        # common case) is masked in-kernel and never pads.
        pad = rows * _LANES - n
        flat_p = jnp.pad(flat_p, (0, pad))
        flat_g = jnp.pad(flat_g, (0, pad))
    p2 = flat_p.reshape(rows, _LANES)
    g2 = flat_g.reshape(rows, _LANES)

    # dtype-aware tile: >= ~2 MiB of each input per grid step (4096 rows f32,
    # 8192 rows bf16, ...) to amortize the ~0.35 us fixed per-step overhead.
    tile_r = min(_TILE_BYTES_TARGET // (_LANES * itemsize),
                 _round_up(rows, 8))
    tile_r = max(8, _round_up(tile_r, 8))
    num_tiles = pl.cdiv(rows, tile_r)
    nc = 2 if num_tiles >= 2 else 1     # 2 partial streams -> megacore on v7x
    inner = pl.cdiv(num_tiles, nc)

    # Clamp block indices so the rounded-up grid never DMAs out of range; the
    # in-kernel row mask zeroes any duplicated / out-of-range contribution.
    def idx(c, j):
        return (jnp.minimum(c * inner + j, num_tiles - 1), 0)

    out = pl.pallas_call(
        functools.partial(_loss_kernel, mode=mode, tile_r=tile_r, rows=rows,
                          inner=inner),
        out_shape=jax.ShapeDtypeStruct((nc * 8, _LANES), jnp.float32),
        grid=(nc, inner),
        in_specs=[
            pl.BlockSpec((tile_r, _LANES), idx),
            pl.BlockSpec((tile_r, _LANES), idx),
        ],
        out_specs=pl.BlockSpec((8, _LANES), lambda c, j: (c, 0)),
        compiler_params=pltpu.CompilerParams(
            dimension_semantics=("parallel", "arbitrary"),
            vmem_limit_bytes=_VMEM_LIMIT),
        cost_estimate=pl.CostEstimate(
            flops=3 * n, transcendentals=0,
            bytes_accessed=2 * rows * _LANES * itemsize + nc * 8 * _LANES * 4),
    )(p2, g2)

    return jnp.sum(out) / jnp.float32(n)


# ---------------------------------------------------------------------------
# Static helper: grad_loss_fn (Sobel-gradient MSE)
# ---------------------------------------------------------------------------
# Sobel weights (same literals as the torch code), only used by the reference.
_SX = ((-1.0, 0.0, 1.0), (-2.0, 0.0, 2.0), (-1.0, 0.0, 1.0))
_SY = ((1.0, 2.0, 1.0), (0.0, 0.0, 0.0), (-1.0, -2.0, -1.0))


def _grad_loss_kernel(pred_ref, gt_ref, out_ref, dacc_ref,
                      *, B, C, H, W, b_inner):
    c = pl.program_id(0)
    bi = pl.program_id(1)
    ci = pl.program_id(2)

    @pl.when((bi == 0) & (ci == 0))
    def _():
        out_ref[...] = jnp.zeros_like(out_ref)

    @pl.when(ci == 0)
    def _():
        dacc_ref[...] = jnp.zeros_like(dacc_ref)

    b_idx = c * b_inner + bi

    # Fused cast/subtract/channel-sum: the conv weights are identical over the
    # input channels and conv is linear, so
    #   conv(gt, S) - conv(pred, S) == conv(sum_c(gt - pred), S).
    # One channel plane per grid step keeps blocks small and the pipeline busy.
    @pl.when(b_idx < B)
    def _():
        dacc_ref[...] += (gt_ref[0, 0].astype(jnp.float32)
                          - pred_ref[0, 0].astype(jnp.float32))

    @pl.when((ci == C - 1) & (b_idx < B))
    def _():
        d = dacc_ref[...]                                    # (H, W) f32
        zrow = jnp.zeros((1, W), jnp.float32)
        zcol = jnp.zeros((H, 1), jnp.float32)
        # Zero-extended row shifts == conv2d(padding=1) at the top/bottom.
        d_dn = jnp.concatenate([zrow, d[:H - 1, :]], axis=0)    # d[i-1, j]
        d_up = jnp.concatenate([d[1:, :], zrow], axis=0)        # d[i+1, j]
        # Separable Sobel: Sx = [1,2,1]^T (x) [-1,0,1],  Sy = [1,0,-1]^T (x) [1,2,1]
        v121 = d_dn + 2.0 * d + d_up
        v1m1 = d_dn - d_up
        # Zero-extended column shifts == padding=1 at the left/right edges.
        gx = (jnp.concatenate([v121[:, 1:], zcol], axis=1)       # v121[i, j+1]
              - jnp.concatenate([zcol, v121[:, :W - 1]], axis=1))
        gy = (jnp.concatenate([zcol, v1m1[:, :W - 1]], axis=1)
              + 2.0 * v1m1
              + jnp.concatenate([v1m1[:, 1:], zcol], axis=1))
        sq = gx * gx + gy * gy                                # (H, W)

        # Fold (H, W) -> (8, W) with sublane-aligned VPU adds; the single tiny
        # cross-lane reduce happens once in the wrapper.
        part = jnp.zeros((8, W), jnp.float32)
        nfull = (H // 8) * 8
        for r in range(0, nfull, 8):
            part = part + sq[r:r + 8, :]
        if nfull != H:
            part = part + jnp.concatenate(
                [sq[nfull:, :], jnp.zeros((8 - (H - nfull), W), jnp.float32)],
                axis=0)
        out_ref[...] += part


def grad_loss(pred, gt):
    assert pred.shape == gt.shape
    B, C, H, W = gt.shape
    itemsize = jnp.dtype(gt.dtype).itemsize
    nc = 2 if B >= 2 else 1            # split batches across v7x's two cores
    b_inner = pl.cdiv(B, nc)

    def idx(c, b, ci):
        return (jnp.minimum(c * b_inner + b, B - 1), ci, 0, 0)

    # TODO(synk): for very large H*W (channel plane >> a few MiB) the per-step
    # block and stencil intermediates should additionally be H-tiled with a
    # 2-row halo; whole (H, W) planes are fine at typical crop sizes.
    out = pl.pallas_call(
        functools.partial(_grad_loss_kernel, B=B, C=C, H=H, W=W,
                          b_inner=b_inner),
        out_shape=jax.ShapeDtypeStruct((nc * 8, W), jnp.float32),
        grid=(nc, b_inner, C),
        in_specs=[
            pl.BlockSpec((1, 1, H, W), idx),
            pl.BlockSpec((1, 1, H, W), idx),
        ],
        out_specs=pl.BlockSpec((8, W), lambda c, b, ci: (c, 0)),
        scratch_shapes=[pltpu.VMEM((H, W), jnp.float32)],
        compiler_params=pltpu.CompilerParams(
            dimension_semantics=("parallel", "arbitrary", "arbitrary"),
            vmem_limit_bytes=_VMEM_LIMIT),
        cost_estimate=pl.CostEstimate(
            flops=(2 * C + 22) * B * H * W, transcendentals=0,
            bytes_accessed=2 * B * C * H * W * itemsize + nc * 8 * W * 4),
    )(pred, gt)

    return jnp.sum(out) / jnp.float32(B * H * W)


class Loss:
    """Pallas-TPU counterpart of Colorization/losses/loss.py::Loss."""

    def __init__(self, mode="L1"):
        self.mode = mode

    def __call__(self, pred, gt):
        return loss_forward(pred, gt, self.mode)

    forward = __call__
    grad_loss_fn = staticmethod(grad_loss)


# ---------------------------------------------------------------------------
# Pure-JAX references for verification
# ---------------------------------------------------------------------------
def _ref_loss(pred, gt, mode):
    d = pred.astype(jnp.float32) - gt.astype(jnp.float32)
    return jnp.mean(jnp.abs(d)) if mode == "L1" else jnp.mean(d * d)


def _ref_grad_loss(pred, gt):
    B, C, H, W = gt.shape
    wx = jnp.broadcast_to(jnp.array(_SX, jnp.float32), (1, C, 3, 3))
    wy = jnp.broadcast_to(jnp.array(_SY, jnp.float32), (1, C, 3, 3))
    conv = lambda x, w: jax.lax.conv_general_dilated(
        x.astype(jnp.float32), w, (1, 1), "SAME",
        dimension_numbers=("NCHW", "OIHW", "NCHW"))
    gx = conv(gt, wx) - conv(pred, wx)
    gy = conv(gt, wy) - conv(pred, wy)
    return jnp.mean(gx * gx) + jnp.mean(gy * gy)


if __name__ == "__main__":
    key = jax.random.PRNGKey(0)
    kp, kg = jax.random.split(key)
    B, C, H, W = 2, 4, 16, 16
    pred = jax.random.normal(kp, (B, C, H, W), dtype=jnp.float32)
    gt = jax.random.normal(kg, (B, C, H, W), dtype=jnp.float32)

    # Forward pass (both modes of the module) + static helper grad_loss_fn.
    l1 = jax.block_until_ready(Loss("L1")(pred, gt))
    mse = jax.block_until_ready(Loss("MSE")(pred, gt))
    gl = jax.block_until_ready(Loss.grad_loss_fn(pred, gt))

    assert jnp.allclose(l1, _ref_loss(pred, gt, "L1"), rtol=1e-5, atol=1e-5)
    assert jnp.allclose(mse, _ref_loss(pred, gt, "MSE"), rtol=1e-5, atol=1e-5)
    assert jnp.allclose(gl, _ref_grad_loss(pred, gt), rtol=1e-4, atol=1e-4)

    # Exercise the in-kernel ragged-tile mask + the 2-way core split
    # (rows > tile_r with rows % tile_r != 0) on a larger single image.
    kp2, kg2 = jax.random.split(kp)
    p_big = jax.random.normal(kp2, (1, 1, 800, 800), dtype=jnp.float32)
    g_big = jax.random.normal(kg2, (1, 1, 800, 800), dtype=jnp.float32)
    l_big = jax.block_until_ready(loss_forward(p_big, g_big, "L1"))
    assert jnp.allclose(l_big, _ref_loss(p_big, g_big, "L1"),
                        rtol=1e-5, atol=1e-5)

    # Exercise the (rare) sub-128 ragged fallback path.
    kp3, kg3 = jax.random.split(kg)
    p_odd = jax.random.normal(kp3, (2, 3, 17, 19), dtype=jnp.float32)
    g_odd = jax.random.normal(kg3, (2, 3, 17, 19), dtype=jnp.float32)
    m_odd = jax.block_until_ready(loss_forward(p_odd, g_odd, "MSE"))
    assert jnp.allclose(m_odd, _ref_loss(p_odd, g_odd, "MSE"),
                        rtol=1e-5, atol=1e-5)

    print("KERNEL_OK")
</pallas_src>

<mosaic_0001>
module attributes {stable_mosaic.version = 11 : i64} {
  func.func @_loss_kernel(%arg0: i32, %arg1: i32, %arg2: memref<16x128xf32, #tpu.memory_space<vmem>>, %arg3: memref<16x128xf32, #tpu.memory_space<vmem>>, %arg4: memref<8x128xf32, #tpu.memory_space<vmem>>) attributes {dimension_semantics = [#tpu.dimension_semantics<parallel>, #tpu.dimension_semantics<arbitrary>], iteration_bounds = array<i64: 1, 1>, scalar_prefetch = 0 : i64, scratch_operands = 0 : i64, tpu.core_type = #tpu.core_type<tc>, window_params = [{transform_indices = @transform_0, window_bounds = array<i64: 16, 128>}, {transform_indices = @transform_1, window_bounds = array<i64: 16, 128>}, {transform_indices = @transform_2, window_bounds = array<i64: 8, 128>}]} {
    %c0_i32 = arith.constant 0 : i32
    %0 = arith.cmpi eq, %arg1, %c0_i32 : i32
    %1 = arith.extui %0 : i1 to i32
    %c0_i32_0 = arith.constant 0 : i32
    %2 = arith.cmpi ne, %1, %c0_i32_0 : i32
    scf.if %2 {
      %cst_7 = arith.constant 0.000000e+00 : f32
      %15 = vector.broadcast %cst_7 : f32 to vector<8x128xf32>
      %c0 = arith.constant 0 : index
      %c0_8 = arith.constant 0 : index
      %16 = vector.load %arg4[%c0, %c0_8] : memref<8x128xf32, #tpu.memory_space<vmem>>, vector<8x128xf32>
      tpu.vector_store %arg4[%c0, %c0_8], %15 {strides = array<i32>} : memref<8x128xf32, #tpu.memory_space<vmem>>, vector<8x128xf32>,
    } else {
    }
    %c1_i32 = arith.constant 1 : i32
    %3 = arith.muli %arg0, %c1_i32 : i32
    %4 = arith.addi %3, %arg1 : i32
    %c16_i32 = arith.constant 16 : i32
    %5 = arith.muli %4, %c16_i32 : i32
    %cst = arith.constant 0.000000e+00 : f32
    %6 = vector.broadcast %cst : f32 to vector<8x128xf32>
    %c16_i32_1 = arith.constant 16 : i32
    %7 = arith.addi %5, %c16_i32_1 : i32
    %c16_i32_2 = arith.constant 16 : i32
    %8 = arith.cmpi sle, %7, %c16_i32_2 : i32
    %9 = arith.extui %8 : i1 to i32
    %c0_i32_3 = arith.constant 0 : i32
    %10 = arith.cmpi ne, %9, %c0_i32_3 : i32
    scf.if %10 {
      %c0_i32_7 = arith.constant 0 : i32
      %c8_i32 = arith.constant 8 : i32
      %15 = arith.muli %c0_i32_7, %c8_i32 : i32
      %16 = tpu.assume_multiple %15, 8 : i32
      %17 = arith.index_cast %16 : i32 to index
      %c0 = arith.constant 0 : index
      %18 = vector.load %arg2[%17, %c0] : memref<16x128xf32, #tpu.memory_space<vmem>>, vector<8x128xf32>
      %19 = arith.index_cast %16 : i32 to index
      %c0_8 = arith.constant 0 : index
      %20 = vector.load %arg3[%19, %c0_8] : memref<16x128xf32, #tpu.memory_space<vmem>>, vector<8x128xf32>
      %21 = arith.subf %18, %20 : vector<8x128xf32>
      %22 = math.absf %21 : vector<8x128xf32>
      %23 = arith.addf %6, %22 : vector<8x128xf32>
      %c1_i32_9 = arith.constant 1 : i32
      %c8_i32_10 = arith.constant 8 : i32
      %24 = arith.muli %c1_i32_9, %c8_i32_10 : i32
      %25 = tpu.assume_multiple %24, 8 : i32
      %26 = arith.index_cast %25 : i32 to index
      %c0_11 = arith.constant 0 : index
      %27 = vector.load %arg2[%26, %c0_11] : memref<16x128xf32, #tpu.memory_space<vmem>>, vector<8x128xf32>
      %28 = arith.index_cast %25 : i32 to index
      %c0_12 = arith.constant 0 : index
      %29 = vector.load %arg3[%28, %c0_12] : memref<16x128xf32, #tpu.memory_space<vmem>>, vector<8x128xf32>
      %30 = arith.subf %27, %29 : vector<8x128xf32>
      %31 = math.absf %30 : vector<8x128xf32>
      %32 = arith.addf %23, %31 : vector<8x128xf32>
      %c2_i32 = arith.constant 2 : i32
      %c0_13 = arith.constant 0 : index
      %c0_14 = arith.constant 0 : index
      %33 = vector.load %arg4[%c0_13, %c0_14] : memref<8x128xf32, #tpu.memory_space<vmem>>, vector<8x128xf32>
      %34 = arith.addf %33, %32 : vector<8x128xf32>
      %c0_15 = arith.constant 0 : index
      %c0_16 = arith.constant 0 : index
      %35 = vector.load %arg4[%c0_15, %c0_16] : memref<8x128xf32, #tpu.memory_space<vmem>>, vector<8x128xf32>
      tpu.vector_store %arg4[%c0_15, %c0_16], %34 {strides = array<i32>} : memref<8x128xf32, #tpu.memory_space<vmem>>, vector<8x128xf32>,
    } else {
    }
    %c16_i32_4 = arith.constant 16 : i32
    %11 = arith.addi %5, %c16_i32_4 : i32
    %c16_i32_5 = arith.constant 16 : i32
    %12 = arith.cmpi sgt, %11, %c16_i32_5 : i32
    %13 = arith.extui %12 : i1 to i32
    %c0_i32_6 = arith.constant 0 : i32
    %14 = arith.cmpi ne, %13, %c0_i32_6 : i32
    scf.if %14 {
      %15 = tpu.iota {dimensions = array<i32: 0>} : vector<8x128xi32>
      %c0_i32_7 = arith.constant 0 : i32
      %c8_i32 = arith.constant 8 : i32
      %16 = arith.muli %c0_i32_7, %c8_i32 : i32
      %17 = tpu.assume_multiple %16, 8 : i32
      %18 = arith.index_cast %17 : i32 to index
      %c0 = arith.constant 0 : index
      %19 = vector.load %arg2[%18, %c0] : memref<16x128xf32, #tpu.memory_space<vmem>>, vector<8x128xf32>
      %20 = arith.index_cast %17 : i32 to index
      %c0_8 = arith.constant 0 : index
      %21 = vector.load %arg3[%20, %c0_8] : memref<16x128xf32, #tpu.memory_space<vmem>>, vector<8x128xf32>
      %22 = arith.subf %19, %21 : vector<8x128xf32>
      %23 = math.absf %22 : vector<8x128xf32>
      %c8_i32_9 = arith.constant 8 : i32
      %24 = arith.muli %c0_i32_7, %c8_i32_9 : i32
      %25 = arith.addi %5, %24 : i32
      %26 = vector.broadcast %25 : i32 to vector<8x128xi32>
      %27 = arith.addi %26, %15 : vector<8x128xi32>
      %c16_i32_10 = arith.constant 16 : i32
      %28 = vector.broadcast %c16_i32_10 : i32 to vector<8x128xi32>
      %29 = arith.cmpi slt, %27, %28 : vector<8x128xi32>
      %cst_11 = arith.constant 0.000000e+00 : f32
      %30 = vector.broadcast %cst_11 : f32 to vector<8x128xf32>
      %31 = arith.select %29, %23, %30 : vector<8x128xi1>, vector<8x128xf32>
      %32 = arith.addf %6, %31 : vector<8x128xf32>
      %c1_i32_12 = arith.constant 1 : i32
      %c8_i32_13 = arith.constant 8 : i32
      %33 = arith.muli %c1_i32_12, %c8_i32_13 : i32
      %34 = tpu.assume_multiple %33, 8 : i32
      %35 = arith.index_cast %34 : i32 to index
      %c0_14 = arith.constant 0 : index
      %36 = vector.load %arg2[%35, %c0_14] : memref<16x128xf32, #tpu.memory_space<vmem>>, vector<8x128xf32>
      %37 = arith.index_cast %34 : i32 to index
      %c0_15 = arith.constant 0 : index
      %38 = vector.load %arg3[%37, %c0_15] : memref<16x128xf32, #tpu.memory_space<vmem>>, vector<8x128xf32>
      %39 = arith.subf %36, %38 : vector<8x128xf32>
      %40 = math.absf %39 : vector<8x128xf32>
      %c8_i32_16 = arith.constant 8 : i32
      %41 = arith.muli %c1_i32_12, %c8_i32_16 : i32
      %42 = arith.addi %5, %41 : i32
      %43 = vector.broadcast %42 : i32 to vector<8x128xi32>
      %44 = arith.addi %43, %15 : vector<8x128xi32>
      %c16_i32_17 = arith.constant 16 : i32
      %45 = vector.broadcast %c16_i32_17 : i32 to vector<8x128xi32>
      %46 = arith.cmpi slt, %44, %45 : vector<8x128xi32>
      %cst_18 = arith.constant 0.000000e+00 : f32
      %47 = vector.broadcast %cst_18 : f32 to vector<8x128xf32>
      %48 = arith.select %46, %40, %47 : vector<8x128xi1>, vector<8x128xf32>
      %49 = arith.addf %32, %48 : vector<8x128xf32>
      %c2_i32 = arith.constant 2 : i32
      %c0_19 = arith.constant 0 : index
      %c0_20 = arith.constant 0 : index
      %50 = vector.load %arg4[%c0_19, %c0_20] : memref<8x128xf32, #tpu.memory_space<vmem>>, vector<8x128xf32>
      %51 = arith.addf %50, %49 : vector<8x128xf32>
      %c0_21 = arith.constant 0 : index
      %c0_22 = arith.constant 0 : index
      %52 = vector.load %arg4[%c0_21, %c0_22] : memref<8x128xf32, #tpu.memory_space<vmem>>, vector<8x128xf32>
      tpu.vector_store %arg4[%c0_21, %c0_22], %51 {strides = array<i32>} : memref<8x128xf32, #tpu.memory_space<vmem>>, vector<8x128xf32>,
    } else {
    }
    return
  }
  func.func @transform_0(%arg0: i32, %arg1: i32) -> (i32, i32) {
    %c1_i32 = arith.constant 1 : i32
    %0 = arith.muli %arg0, %c1_i32 : i32
    %1 = arith.addi %0, %arg1 : i32
    %c0_i32 = arith.constant 0 : i32
    %2 = arith.minsi %1, %c0_i32 : i32
    %c0_i32_0 = arith.constant 0 : i32
    %c0_i32_1 = arith.constant 0 : i32
    return %2, %c0_i32_0 : i32, i32
  }
  func.func @transform_1(%arg0: i32, %arg1: i32) -> (i32, i32) {
    %c1_i32 = arith.constant 1 : i32
    %0 = arith.muli %arg0, %c1_i32 : i32
    %1 = arith.addi %0, %arg1 : i32
    %c0_i32 = arith.constant 0 : i32
    %2 = arith.minsi %1, %c0_i32 : i32
    %c0_i32_0 = arith.constant 0 : i32
    %c0_i32_1 = arith.constant 0 : i32
    return %2, %c0_i32_0 : i32, i32
  }
  func.func @transform_2(%arg0: i32, %arg1: i32) -> (i32, i32) {
    %c0_i32 = arith.constant 0 : i32
    %c0_i32_0 = arith.constant 0 : i32
    return %arg0, %c0_i32 : i32, i32
  }
}

</mosaic_0001>

<bundles_post_ra>
// kernel: tpu_custom_call.1
= control target key start
LH: loop header
LB: loop body
LE: loop exit
PB: predicated region body
PF: predicated region fallthrough
CT: control target
= control target key end

     0   :  { %7 = vsyncpa [#allocation3], 0  ;;  %s271_s0 = inlined_call_operand.hbm [shape: f32[16,128], index: 0, kind: input, shape index: {}]   ;;  %s272_s1 = inlined_call_operand.hbm [shape: f32[16,128], index: 1, kind: input, shape index: {}]   ;;  %s273_s2 = inlined_call_operand.hbm [shape: f32[8,128], index: 2, kind: output, shape index: {}]  }
   0x1   :  { %8 = vsyncpa [#allocation6], 0 }
   0x2   :  { %9 = vsyncpa [#allocation4], 0  ;;  %s215_s9 = smov [#allocation2]   ;;  %s143_s13 = scalar_lea.hbm %s271_s0, 256 }
   0x3   :  { %s21_s10 = sshll.u32 %s215_s9, 4  ;;  %p144_p0 = scmp.ne.s32.totalorder %s271_s0, %s143_s13  ;;  %s22_s10 = int_to_ptr.vmem [resolvable:$true] %s21_s10 }
   0x4   :  { %p147_p1 = scmp.lt.u32.totalorder %s143_s13, %s271_s0 }
   0x6   :  { %p149_p2 = pnand %p147_p1, %p144_p0 }
   0x8   :  { %152 = shalt.err (!%p149_p2)
}
   0x9   :  { %s153_s18 = scalar_lea.vmem %s22_s10, 256  ;;  %p158_p4 = scmp.lt.s32.totalorder %s22_s10, %s22_s10 }
   0xa   :  { %p154_p3 = scmp.ne.s32.totalorder %s22_s10, %s153_s18  ;;  %p159_p5 = scmp.lt.s32.totalorder %s153_s18, %s153_s18 }
   0xc   :  { %p160_p6 = por %p159_p5, %p158_p4 }
   0xe   :  { %p161_p7 = pnand %p160_p6, %p154_p3 }
  0x10   :  { %164 = shalt.err (!%p161_p7)
}
  0x11   :  { %s216_s19 = smov 128   ;;  %s217_s20 = smov 8  }
  0x12   :  { %27 = dma.hbm_to_vmem [thread:$0]  %s271_s0, 256, %s22_s10, [#allocation3], %s216_s19, %s216_s19, %s217_s20  }
  0x13   :  { %s218_s23 = smov [#allocation5]   ;;  %s165_s27 = scalar_lea.hbm %s272_s1, 256 }
  0x14   :  { %s39_s24 = sshll.u32 %s218_s23, 4  ;;  %p166_p8 = scmp.ne.s32.totalorder %s272_s1, %s165_s27  ;;  %s40_s24 = int_to_ptr.vmem [resolvable:$true] %s39_s24 }
  0x15   :  { %p169_p9 = scmp.lt.u32.totalorder %s165_s27, %s272_s1 }
  0x17   :  { %p171_p10 = pnand %p169_p9, %p166_p8 }
  0x19   :  { %174 = shalt.err (!%p171_p10)
}
  0x1a   :  { %s175_s4 = scalar_lea.vmem %s40_s24, 256  ;;  %p180_p12 = scmp.lt.s32.totalorder %s40_s24, %s40_s24 }
  0x1b   :  { %p176_p11 = scmp.ne.s32.totalorder %s40_s24, %s175_s4  ;;  %p181_p13 = scmp.lt.s32.totalorder %s175_s4, %s175_s4 }
  0x1d   :  { %p182_p0 = por %p181_p13, %p180_p12 }
  0x1f   :  { %p183_p1 = pnand %p182_p0, %p176_p11 }
  0x21   :  { %186 = shalt.err (!%p183_p1)
}
  0x22   :  { %45 = dma.hbm_to_vmem [thread:$0]  %s272_s1, 256, %s40_s24, [#allocation6], %s216_s19, %s216_s19, %s217_s20  }
  0x23   :  { %209 = dma.done.wait [#allocation3], 256  }
  0x24   :  { %210 = vsyncadd [#allocation3], 4294967040 }
  0x25   :  { %211 = dma.done.wait [#allocation6], 256  }
  0x26   :  { %212 = vsyncadd [#allocation6], 4294967040  ;;  %v72_v0 = vld [vmem:[#allocation2] sm:$0xff]  ;;  %v73_v1 = vld [vmem:[#allocation5] sm:$0xff]  ;;  %s219_s6 = smov [#allocation7]  }
  0x27   :  { %v78_v2 = vld [vmem:[#allocation2 + $0x8] sm:$0xff]  ;;  %v74_v3 = vsub.f32 %v72_v0, %v73_v1  ;;  %v80_v4 = vld [vmem:[#allocation5 + $0x8] sm:$0xff]  ;;  %s123_s7 = sshll.u32 %s219_s6, 4  ;;  %s124_s7 = int_to_ptr.vmem [resolvable:$true] %s123_s7 }
  0x28   :  { %v81_v5 = vsub.f32 %v78_v2, %v80_v4  ;;  %s187_s8 = scalar_lea.vmem %s124_s7, 128  ;;  %p192_p3 = scmp.lt.s32.totalorder %s124_s7, %s124_s7 }
  0x29   :  { %v75_v6 = vand.u32 2147483647, %v74_v3  ;;  %p188_p2 = scmp.ne.s32.totalorder %s124_s7, %s187_s8  ;;  %p193_p4 = scmp.lt.s32.totalorder %s187_s8, %s187_s8 }
  0x2a   :  { %v82_v7 = vand.u32 2147483647, %v81_v5 }
  0x2b   :  { %p194_p5 = por %p193_p4, %p192_p3 }
  0x2c   :  { %v83_v8 = vadd.f32 %v82_v7, %v75_v6 }
  0x2d   :  { %p195_p6 = pnand %p194_p5, %p188_p2 }
  0x2e   :  { %86 = vst [vmem:[#allocation7] sm:$0xff] %v83_v8 }
  0x2f   :  { %198 = shalt.err (!%p195_p6)
}
  0x30   :  { %s199_s10 = scalar_lea.hbm %s273_s2, 128 }
  0x31   :  { %p200_p7 = scmp.ne.s32.totalorder %s273_s2, %s199_s10  ;;  %p203_p8 = scmp.lt.u32.totalorder %s199_s10, %s273_s2 }
  0x33   :  { %p205_p9 = pnand %p203_p8, %p200_p7 }
  0x35   :  { %208 = shalt.err (!%p205_p9)
}
  0x36   :  { %126 = dma.vmem_to_hbm [thread:$0]  %s124_s7, 128, %s273_s2, [#allocation4]  }
  0x37   :  { %213 = dma.done.wait [#allocation4], 128  }
  0x38   :  { %214 = vsyncadd [#allocation4], 4294967168 }
  0x39   :  { %130 = vsyncpa [#allocation3], 1 }
  0x3a   :  { %131 = vsyncpa [#allocation6], 1 }
  0x3b   :  { %132 = vsyncpa [#allocation4], 1 }

</bundles_post_ra>
